<compile_context>
chip_gen: v6e
topology: v6e:2x2x1
jax: 0.10.0
libtpu: 0.0.40
codegen_flags: <defaults>
</compile_context>

<pallas_src>
import functools

import jax
import jax.numpy as jnp
from jax.experimental import pallas as pl
from jax.experimental.pallas import tpu as pltpu

_NEG_LOGIT = -1e30  # finite "minus infinity" for padded output lanes


def _round_up(x, m):
    return ((x + m - 1) // m) * m


def _listener_kernel(msg_ref, w1_ref, b1_ref, w2_ref, b2_ref, out_ref, *,
                     apply_softmax):
    """Fused Linear -> ReLU -> Linear -> (softmax) on one batch tile.

    msg/w1/w2 are bf16 (MXU operands); accumulation, biases, ReLU and softmax
    run in f32. Output lanes beyond the real out_dim hold ~0 probability
    (their logits are driven to -1e30 via the padded bias).
    """
    x = msg_ref[...]                                               # (bt, F_pad) bf16
    h = jnp.dot(x, w1_ref[...], preferred_element_type=jnp.float32)
    h = jnp.maximum(h + b1_ref[...], 0.0)                          # f32 ReLU
    logits = jnp.dot(h.astype(w2_ref.dtype), w2_ref[...],
                     preferred_element_type=jnp.float32) + b2_ref[...]
    if apply_softmax:
        m = jnp.max(logits, axis=-1, keepdims=True)
        e = jnp.exp(logits - m)                                    # padded lanes -> ~0
        denom = jnp.sum(e, axis=-1, keepdims=True)
        out_ref[...] = e * pl.reciprocal(denom, approx=True)
    else:
        out_ref[...] = logits


def listener_forward(params, message, *, classification=True, out_shape=None,
                     block_b=256):
    """Listener forward pass.

    message: (B, L, V) or (L, V) float.
    classification=True  -> per-row softmax over out_dim (torch classification path).
    classification=False -> torch reshapes logits to `out_shape` BEFORE the
                            softmax; the kernel emits raw logits and the grouped
                            softmax runs in the wrapper on the tiny head.
    """
    w1, b1, w2, b2 = params["w1"], params["b1"], params["w2"], params["b2"]

    batched = message.ndim == 3
    if not batched:
        message = message[None]
    B = message.shape[0]
    F, H = w1.shape
    O = w2.shape[1]

    F_pad = _round_up(F, 128)
    H_pad = _round_up(H, 128)
    O_pad = _round_up(O, 128)

    # Zero-padded weights/inputs contribute exactly 0 to the real lanes; b2's
    # padded lanes get a large-negative value so they vanish in the softmax.
    w1p = jnp.pad(w1, ((0, F_pad - F), (0, H_pad - H))).astype(jnp.bfloat16)
    b1p = jnp.pad(b1, ((0, 0), (0, H_pad - H))).astype(jnp.float32)
    w2p = jnp.pad(w2, ((0, H_pad - H), (0, O_pad - O))).astype(jnp.bfloat16)
    b2p = jnp.pad(b2, ((0, 0), (0, O_pad - O)),
                  constant_values=_NEG_LOGIT).astype(jnp.float32)

    # Batch tiling: keep tiles a multiple of 8 sublanes; don't over-pad tiny B.
    block_b = max(8, min(block_b, _round_up(B, 8)))
    n_tiles = pl.cdiv(B, block_b)
    B_pad = n_tiles * block_b

    flat = message.reshape(B, F)
    # Padded batch rows produce uniform softmax rows; they are sliced off below.
    flat = jnp.pad(flat, ((0, B_pad - B), (0, F_pad - F))).astype(jnp.bfloat16)

    out = pl.pallas_call(
        functools.partial(_listener_kernel, apply_softmax=classification),
        out_shape=jax.ShapeDtypeStruct((B_pad, O_pad), jnp.float32),
        grid=(n_tiles,),
        in_specs=[
            pl.BlockSpec((block_b, F_pad), lambda i: (i, 0)),   # message tile
            # Weights/biases: constant index_map -> DMA'd once, resident in VMEM.
            pl.BlockSpec((F_pad, H_pad), lambda i: (0, 0)),     # receiver1 weight
            pl.BlockSpec((1, H_pad), lambda i: (0, 0)),         # receiver1 bias
            pl.BlockSpec((H_pad, O_pad), lambda i: (0, 0)),     # receiver2 weight
            pl.BlockSpec((1, O_pad), lambda i: (0, 0)),         # receiver2 bias
        ],
        out_specs=pl.BlockSpec((block_b, O_pad), lambda i: (i, 0)),
        compiler_params=pltpu.CompilerParams(
            dimension_semantics=("parallel",)),
    )(flat, w1p, b1p, w2p, b2p)

    if classification:
        probs = out[:B, :O]
        return probs if batched else probs[0]

    # Non-classification path: softmax over groups of out_shape[-1] (matches
    # torch softmax(x6.view(out_shape), dim=-1)); logits head is tiny.
    # TODO(synk): fuse this grouped softmax into the kernel if it ever matters.
    logits = out[:B, :O]
    logits = logits.reshape(((B,) if batched else ()) + tuple(out_shape))
    return jax.nn.softmax(logits, axis=-1)


def init_params(key, message_shape, out_shape, hidden2, classification=True):
    """Torch-style uniform init; weights stored transposed as (in, out)."""
    L, V = message_shape
    in_dim = L * V
    out_dim = (out_shape[1] ** out_shape[0] if classification
               else out_shape[0] * out_shape[1])
    ks = jax.random.split(key, 4)

    def uni(k, shape, fan_in):
        b = 1.0 / float(fan_in) ** 0.5
        return jax.random.uniform(k, shape, jnp.float32, -b, b)

    params = dict(
        w1=uni(ks[0], (in_dim, hidden2), in_dim),
        b1=uni(ks[1], (1, hidden2), in_dim),
        w2=uni(ks[2], (hidden2, out_dim), hidden2),
        b2=uni(ks[3], (1, out_dim), hidden2),
    )
    return params, out_dim


if __name__ == "__main__":
    MESSAGE_SHAPE = (6, 16)    # (message length, vocab) -> F = 96 (padded to 128)
    OUT_SHAPE = (2, 4)         # classification -> 4**2 = 16 classes (padded to 128)
    HIDDEN2 = 128              # lane-dense hidden width
    BATCH = 512                # 2 batch tiles of 256 -> both v7x TCs get work

    key = jax.random.PRNGKey(0)
    kp, km = jax.random.split(key, 2)
    params, out_dim = init_params(kp, MESSAGE_SHAPE, OUT_SHAPE, HIDDEN2,
                                  classification=True)
    message = jax.random.normal(km, (BATCH,) + MESSAGE_SHAPE, jnp.float32)

    # Classification path (fully fused softmax in the kernel).
    probs = listener_forward(params, message, classification=True, block_b=256)
    probs = jax.block_until_ready(probs)

    assert probs.shape == (BATCH, out_dim)
    assert bool(jnp.isfinite(probs).all())
    row_sums = jnp.sum(probs, axis=-1)
    assert bool(jnp.all(jnp.abs(row_sums - 1.0) < 1e-2))

    # Pure-JAX f32 reference (bf16 matmul tolerance).
    flat = message.reshape(BATCH, -1)
    h_ref = jnp.maximum(flat @ params["w1"] + params["b1"], 0.0)
    ref = jax.nn.softmax(h_ref @ params["w2"] + params["b2"], axis=-1)
    assert bool(jnp.max(jnp.abs(probs - ref)) < 5e-2)

    # Non-classification path (unbatched, grouped softmax after reshape).
    params_nc, _ = init_params(kp, MESSAGE_SHAPE, OUT_SHAPE, HIDDEN2,
                               classification=False)
    y = listener_forward(params_nc, message[0], classification=False,
                         out_shape=OUT_SHAPE)
    y = jax.block_until_ready(y)
    assert y.shape == OUT_SHAPE
    assert bool(jnp.all(jnp.abs(jnp.sum(y, axis=-1) - 1.0) < 1e-2))

    print("KERNEL_OK")
</pallas_src>

<mosaic_0001>
module attributes {stable_mosaic.version = 11 : i64} {
  func.func @_listener_kernel(%arg0: i32, %arg1: memref<256x128xbf16, #tpu.memory_space<vmem>>, %arg2: memref<128x128xbf16, #tpu.memory_space<vmem>>, %arg3: memref<1x128xf32, #tpu.memory_space<vmem>>, %arg4: memref<128x128xbf16, #tpu.memory_space<vmem>>, %arg5: memref<1x128xf32, #tpu.memory_space<vmem>>, %arg6: memref<256x128xf32, #tpu.memory_space<vmem>>) attributes {dimension_semantics = [#tpu.dimension_semantics<parallel>], iteration_bounds = array<i64: 2>, scalar_prefetch = 0 : i64, scratch_operands = 0 : i64, tpu.core_type = #tpu.core_type<tc>, window_params = [{transform_indices = @transform_0, window_bounds = array<i64: 256, 128>}, {pipeline_mode = #tpu.pipeline_mode<synchronous>, transform_indices = @transform_1, window_bounds = array<i64: 128, 128>}, {pipeline_mode = #tpu.pipeline_mode<synchronous>, transform_indices = @transform_2, window_bounds = array<i64: 1, 128>}, {pipeline_mode = #tpu.pipeline_mode<synchronous>, transform_indices = @transform_3, window_bounds = array<i64: 128, 128>}, {pipeline_mode = #tpu.pipeline_mode<synchronous>, transform_indices = @transform_4, window_bounds = array<i64: 1, 128>}, {transform_indices = @transform_5, window_bounds = array<i64: 256, 128>}]} {
    %c0 = arith.constant 0 : index
    %c0_0 = arith.constant 0 : index
    %0 = vector.load %arg1[%c0, %c0_0] : memref<256x128xbf16, #tpu.memory_space<vmem>>, vector<256x128xbf16>
    %c0_1 = arith.constant 0 : index
    %c0_2 = arith.constant 0 : index
    %1 = vector.load %arg2[%c0_1, %c0_2] : memref<128x128xbf16, #tpu.memory_space<vmem>>, vector<128x128xbf16>
    %cst = arith.constant dense<0.000000e+00> : vector<256x128xf32>
    %2 = tpu.matmul %0, %1, %cst {dimension_numbers = #tpu.dot_dimension_numbers<[1], [0], [0], [1], [0, 0, 1, 1], [], []>} : vector<256x128xbf16>, vector<128x128xbf16>, vector<256x128xf32> -> vector<256x128xf32>
    %c0_3 = arith.constant 0 : index
    %c0_4 = arith.constant 0 : index
    %3 = vector.load %arg3[%c0_3, %c0_4] : memref<1x128xf32, #tpu.memory_space<vmem>>, vector<1x128xf32>
    %4 = vector.broadcast %3 : vector<1x128xf32> to vector<256x128xf32>
    %5 = arith.addf %2, %4 : vector<256x128xf32>
    %cst_5 = arith.constant 0.000000e+00 : f32
    %6 = vector.broadcast %cst_5 : f32 to vector<256x128xf32>
    %7 = arith.maximumf %5, %6 : vector<256x128xf32>
    %8 = arith.truncf %7 : vector<256x128xf32> to vector<256x128xbf16>
    %c0_6 = arith.constant 0 : index
    %c0_7 = arith.constant 0 : index
    %9 = vector.load %arg4[%c0_6, %c0_7] : memref<128x128xbf16, #tpu.memory_space<vmem>>, vector<128x128xbf16>
    %cst_8 = arith.constant dense<0.000000e+00> : vector<256x128xf32>
    %10 = tpu.matmul %8, %9, %cst_8 {dimension_numbers = #tpu.dot_dimension_numbers<[1], [0], [0], [1], [0, 0, 1, 1], [], []>} : vector<256x128xbf16>, vector<128x128xbf16>, vector<256x128xf32> -> vector<256x128xf32>
    %c0_9 = arith.constant 0 : index
    %c0_10 = arith.constant 0 : index
    %11 = vector.load %arg5[%c0_9, %c0_10] : memref<1x128xf32, #tpu.memory_space<vmem>>, vector<1x128xf32>
    %12 = vector.broadcast %11 : vector<1x128xf32> to vector<256x128xf32>
    %13 = arith.addf %10, %12 : vector<256x128xf32>
    %cst_11 = arith.constant dense<0xFF800000> : vector<256xf32>
    %14 = vector.multi_reduction <maximumf>, %13, %cst_11 [1] : vector<256x128xf32> to vector<256xf32>
    %15 = vector.shape_cast %14 : vector<256xf32> to vector<256x1xf32>
    %16 = vector.broadcast %15 : vector<256x1xf32> to vector<256x128xf32>
    %17 = arith.subf %13, %16 : vector<256x128xf32>
    %18 = math.exp %17 : vector<256x128xf32>
    %cst_12 = arith.constant dense<0.000000e+00> : vector<256xf32>
    %19 = vector.multi_reduction <add>, %18, %cst_12 [1] : vector<256x128xf32> to vector<256xf32>
    %20 = vector.shape_cast %19 : vector<256xf32> to vector<256x1xf32>
    %21 = tpu.reciprocal %20 {approx = true} : vector<256x1xf32> -> vector<256x1xf32>
    %22 = vector.broadcast %21 : vector<256x1xf32> to vector<256x128xf32>
    %23 = arith.mulf %18, %22 : vector<256x128xf32>
    %c0_13 = arith.constant 0 : index
    %c0_14 = arith.constant 0 : index
    %24 = vector.load %arg6[%c0_13, %c0_14] : memref<256x128xf32, #tpu.memory_space<vmem>>, vector<256x128xf32>
    tpu.vector_store %arg6[%c0_13, %c0_14], %23 {strides = array<i32>} : memref<256x128xf32, #tpu.memory_space<vmem>>, vector<256x128xf32>,
    return
  }
  func.func @transform_0(%arg0: i32) -> (i32, i32) {
    %c0_i32 = arith.constant 0 : i32
    %c0_i32_0 = arith.constant 0 : i32
    return %arg0, %c0_i32 : i32, i32
  }
  func.func @transform_1(%arg0: i32) -> (i32, i32) {
    %c0_i32 = arith.constant 0 : i32
    %c0_i32_0 = arith.constant 0 : i32
    %c0_i32_1 = arith.constant 0 : i32
    return %c0_i32, %c0_i32_0 : i32, i32
  }
  func.func @transform_2(%arg0: i32) -> (i32, i32) {
    %c0_i32 = arith.constant 0 : i32
    %c0_i32_0 = arith.constant 0 : i32
    %c0_i32_1 = arith.constant 0 : i32
    return %c0_i32, %c0_i32_0 : i32, i32
  }
  func.func @transform_3(%arg0: i32) -> (i32, i32) {
    %c0_i32 = arith.constant 0 : i32
    %c0_i32_0 = arith.constant 0 : i32
    %c0_i32_1 = arith.constant 0 : i32
    return %c0_i32, %c0_i32_0 : i32, i32
  }
  func.func @transform_4(%arg0: i32) -> (i32, i32) {
    %c0_i32 = arith.constant 0 : i32
    %c0_i32_0 = arith.constant 0 : i32
    %c0_i32_1 = arith.constant 0 : i32
    return %c0_i32, %c0_i32_0 : i32, i32
  }
  func.func @transform_5(%arg0: i32) -> (i32, i32) {
    %c0_i32 = arith.constant 0 : i32
    %c0_i32_0 = arith.constant 0 : i32
    return %arg0, %c0_i32 : i32, i32
  }
}

</mosaic_0001>

<bundles_post_ra>
// kernel: tpu_custom_call.1
= control target key start
LH: loop header
LB: loop body
LE: loop exit
PB: predicated region body
PF: predicated region fallthrough
CT: control target
= control target key end

     0   :  { %10 = vsyncpa [#allocation3], 0  ;;  %s2539_s0 = inlined_call_operand.hbm [shape: bf16[512,128], index: 0, kind: input, shape index: {}]   ;;  %s2540_s1 = inlined_call_operand.hbm [shape: bf16[128,128], index: 1, kind: input, shape index: {}]   ;;  %s2541_s2 = inlined_call_operand.vmem [shape: f32[1,128], index: 2, kind: input, shape index: {}]   ;;  %s2542_s3 = inlined_call_operand.hbm [shape: bf16[128,128], index: 3, kind: input, shape index: {}]   ;;  %s2543_s4 = inlined_call_operand.vmem [shape: f32[1,128], index: 4, kind: input, shape index: {}]   ;;  %s2544_s5 = inlined_call_operand.hbm [shape: f32[512,128], index: 5, kind: output, shape index: {}]  }
   0x1   :  { %12 = vsyncpa [#allocation3 + $0x1], 0 }
   0x2   :  { %13 = vsyncpa [#allocation6], 0 }
   0x3   :  { %14 = vsyncpa [#allocation4], 0 }
   0x4   :  { %16 = vsyncpa [#allocation4 + $0x1], 0  ;;  %s1958_s18 = smov 0   ;;  %s1960_s19 = smov 0  }
   0x5   :  { %s1962_s20 = smov 0   ;;  %s1964_s21 = smov 0  }
   0x6 LB: > { %s1979_s22 = sadd.s32 4294967295, %s1918_s21   ;;  %s1341_s23 = sadd.s32 4294967294, %s1918_s21   ;;  %s1918_s21 = sphi %s1964_s21, %s2567_s21   ;;  %s1914_s20 = sphi %s1962_s20, %s2566_s20   ;;  %s1910_s19 = sphi %s1960_s19, %s2565_s19   ;;  %s1906_s18 = sphi %s1958_s18, %s2564_s18  }
   0x7   : > { %p42_p0 = scmp.ne.s32.totalorder %s1910_s19, %s1906_s18  ;;  %p2545_p1 = scmp.eq.s32.totalorder %s1979_s22, 0 }
   0x8   : > { %p150_p2 = scmp.eq.s32.totalorder %s1979_s22, 1  ;;  %p156_p3 = scmp.eq.s32.totalorder %s1341_s23, 1 }
   0x9   : > { %p1988_p4 = por %p2545_p1, %p42_p0  ;;  %p1342_p5 = scmp.ge.s32.totalorder %s1918_s21, 1 }
   0xa   : > { %p1993_p6 = por %p156_p3, %p42_p0  ;;  %p163_p7 = scmp.lt.s32.totalorder %s1918_s21, 3 }
   0xb   : > { %s2550_s24 = scalar_select %p1988_p4, 1, 0 }
   0xc   : > { %s2551_s25 = scalar_select %p1993_p6, 1, 0 }
   0xd   : > { %p1998_p8 = pnand %p1342_p5, %p163_p7  ;;  %s1920_s27 = smov [#allocation5]  }
   0xe   : > { %s175_s28 = sshll.u32 %s1920_s27, 4  ;;  %s1921_s30 = smov [#allocation7]   ;;  %s176_s28 = int_to_ptr.vmem [resolvable:$true] %s175_s28 }
   0xf   : > { %s2552_s26 = scalar_select %p1998_p8, 1, 0 }
  0x10   : > { %p1551_p9 = pneg %p1998_p8  ;;  %s191_s6 = sshll.u32 %s1921_s30, 4  ;;  %s192_s6 = int_to_ptr.vmem [resolvable:$true] %s191_s6 }
  0x11   : > { %s1781_s7 = scalar_lea.vmem %s176_s28, 1024  ;;  %p1789_p5 = scmp.lt.s32.totalorder %s176_s28, %s176_s28 }
  0x12   : > { %p2007_p11 = pnand %p1551_p9, %p2545_p1  ;;  %p1782_p13 = scmp.ne.s32.totalorder %s176_s28, %s1781_s7 }
  0x13   : > { %p1790_p7 = scmp.lt.s32.totalorder %s1781_s7, %s1781_s7 }
  0x14   : > { %p1772_p12 = pneg %p2007_p11 }
  0x15   : > { %p1791_p10 = por %p1790_p7, %p1789_p5 }
  0x16   : > { %p1784_p0 = pnand %p1782_p13, %p1772_p12 }
  0x18   : > { %p1785_p3 = pneg %p1784_p0 }
  0x1a   : > { %p1792_p9 = pnand %p1791_p10, %p1785_p3 }
  0x1c   : > { %1795 = shalt.err (!%p1792_p9)
}
  0x1d   : > { %s2546_s8 = smov 64   ;;  %s1923_s9 = smov 4  }
  0x1e   : > { %1554 = dma.hbm_to_vmem [thread:$0]  (!%p2007_p11), %s2540_s1, 1024, %s176_s28, [#allocation6], %s2546_s8, %s2546_s8, %s1923_s9  }
  0x1f   : > { %s1807_s12 = scalar_lea.vmem %s192_s6, 1024  ;;  %p1815_p10 = scmp.lt.s32.totalorder %s192_s6, %s192_s6 }
  0x20   : > { %p1808_p13 = scmp.ne.s32.totalorder %s192_s6, %s1807_s12  ;;  %p1816_p3 = scmp.lt.s32.totalorder %s1807_s12, %s1807_s12 }
  0x22   : > { %p1810_p0 = pnand %p1808_p13, %p1772_p12  ;;  %p1817_p7 = por %p1816_p3, %p1815_p10 }
  0x24   : > { %p1811_p5 = pneg %p1810_p0 }
  0x26   : > { %p1818_p9 = pnand %p1817_p7, %p1811_p5 }
  0x28   : > { %1821 = shalt.err (!%p1818_p9)
}
  0x29   : > { %1557 = dma.hbm_to_vmem [thread:$0]  (!%p2007_p11), %s2542_s3, 1024, %s192_s6, [#allocation6], %s2546_s8, %s2546_s8, %s1923_s9  }
  0x2a   : > { %s2036_s15 = sadd.s32 1, %s1918_s21   ;;  %s29_s16 = sadd.s32 1, %s1914_s20 }
  0x2b   : > { %s26_s17 = ssub.s32 %s1918_s21, %s2036_s15  ;;  %p36_p12 = scmp.ne.s32.totalorder %s1914_s20, %s1910_s19 }
  0x2c   : > { %p27_p13 = scmp.eq.s32.totalorder %s26_s17, 0  ;;  %p37_p0 = scmp.eq.s32.totalorder %s1918_s21, 0 }
  0x2d   : > { %p2046_p5 = por %p150_p2, %p36_p12  ;;  %p1568_p10 = scmp.lt.s32.totalorder %s1918_s21, 2 }
  0x2e   : > { %s2052_s27 = scalar_select %p27_p13, %s1914_s20, %s29_s16  }
  0x2f   : > { %s2554_s23 = scalar_select %p2046_p5, 1, 0 }
  0x30   : > { %p38_p3 = por %p37_p0, %p36_p12  ;;  %s208_s28 = sand.u32 1, %s1914_s20  }
  0x31   : > { %s1346_s29 = sshll.u32 %s208_s28, 7  ;;  %s1393_s30 = sshll.u32 %s1918_s21, 11 }
  0x32   : > { %s2059_s10 = scalar_lea.hbm %s2539_s0, %s1393_s30  ;;  %s212_s11 = scalar_lea.vmem [#allocation2], %s1346_s29 }
  0x33   : > { %s219_s12 = sshll.u32 %s212_s11, 4  ;;  %p2063_p2 = pnand %p1568_p10, %p38_p3  ;;  %s2061_s12 = int_to_ptr.vmem [resolvable:$true] %s219_s12 }
  0x34   : > { %s2067_s14 = scalar_lea.sflag [#allocation3], %s208_s28  ;;  %s1822_s16 = scalar_lea.hbm %s2059_s10, 2048 }
  0x35   : > { %p1823_p11 = scmp.ne.s32.totalorder %s2059_s10, %s1822_s16  ;;  %p1824_p7 = pneg %p2063_p2 }
  0x36   : > { %s1827_s29 = scalar_lea.hbm %s2539_s0, 4096  ;;  %p1828_p13 = scmp.lt.s32.totalorder %s2059_s10, %s2539_s0 }
  0x37   : > { %p1825_p9 = pnand %p1824_p7, %p1823_p11  ;;  %p1829_p0 = scmp.lt.s32.totalorder %s1827_s29, %s1822_s16 }
  0x39   : > { %p1826_p12 = pneg %p1825_p9  ;;  %p1830_p10 = por %p1829_p0, %p1828_p13 }
  0x3b   : > { %p1831_p3 = pnand %p1830_p10, %p1826_p12 }
  0x3d   : > { %1834 = shalt.err (!%p1831_p3)
}
  0x3e   : > { %s1835_s28 = scalar_lea.vmem %s2061_s12, 2048  ;;  %s1924_s11 = smov [#allocation2]  }
  0x3f   : > { %p1836_p1 = scmp.ne.s32.totalorder %s2061_s12, %s1835_s28  ;;  %s1840_s8 = sshll.u32 %s1924_s11, 4  ;;  %s1841_s8 = int_to_ptr.vmem [resolvable:$false] %s1840_s8 }
  0x40   : > { %s1842_s17 = scalar_lea.vmem %s1841_s8, 4096  ;;  %p1843_p9 = scmp.lt.s32.totalorder %s2061_s12, %s1841_s8 }
  0x41   : > { %p1838_p6 = pnand %p1836_p1, %p1824_p7  ;;  %p1844_p5 = scmp.lt.s32.totalorder %s1842_s17, %s1835_s28 }
  0x43   : > { %p1839_p11 = pneg %p1838_p6  ;;  %p1845_p4 = por %p1844_p5, %p1843_p9 }
  0x45   : > { %p1846_p8 = pnand %p1845_p4, %p1839_p11 }
  0x47   : > { %1849 = shalt.err (!%p1846_p8)
}
  0x48   : > { %s2556_s16 = smov 64   ;;  %p2557_p1 = scmp.ne.s32.totalorder %s2552_s26, 0 }
  0x49   : > { %1561 = dma.hbm_to_vmem [thread:$0]  (!%p2063_p2), %s2059_s10, 2048, %s2061_s12, %s2067_s14, %s2556_s16, %s2556_s16, %s1923_s9  }
  0x4a   : > { %231 = sbr.rel (%p2557_p1) target bundleno = 907 (0x38b), region = 40  ;;  %s2094_s30 = sand.u32 (!%p2557_p1), 1, %s1910_s19  }
  0x4b   : > { %s1350_s8 = sshll.u32 (!%p2557_p1), %s2094_s30, 7  ;;  %s234_s29 = scalar_lea.sflag (!%p2557_p1), [#allocation3], %s2094_s30 }
  0x4c   : > { %s2098_s6 = scalar_lea.vmem (!%p2557_p1), [#allocation2], %s1350_s8  ;;  %p2558_p4 = scmp.ne.s32.totalorder (!%p2557_p1), %s2550_s24, 0 }
  0x4f   : > { %1893 = dma.done.wait (%p2558_p4), %s234_s29, 2048  }
  0x50   : > { %1895 = vsyncadd (%p2558_p4), %s234_s29, 4294965248  ;;  %p2559_p6 = scmp.eq.s32.totalorder %s1979_s22, 0 }
  0x52   : > { %1897 = dma.done.wait (%p2559_p6), [#allocation6], 2048   ;;  %p2560_p8 = pmov %p2559_p6 }
  0x53   : > { %v1610_v0 = vld [vmem:[#allocation5 + $0x38] sm:$0xff]   ;;  %v1611_v1 = vld [vmem:[#allocation5 + $0x30] sm:$0xff]   ;;  %v1612_v2 = vld [vmem:[#allocation5 + $0x28] sm:$0xff]   ;;  %s1353_s12 = sshll.u32 %s2094_s30, 8  ;;  %s1394_s14 = sshll.u32 %s1979_s22, 12 }
  0x54   : > { %1899 = vsyncadd (%p2560_p8), [#allocation6], 4294965248  ;;  %1443 = vmatprep.subr.bf16.mxu0 %v1610_v0  ;;  %v1613_v3 = vld [vmem:[#allocation5 + $0x20] sm:$0xff]   ;;  %v1614_v5 = vld [vmem:[#allocation5 + $0x18] sm:$0xff]   ;;  %s2424_s13 = scalar_lea.vmem [#allocation8], %s1353_s12  ;;  %s2492_s17 = scalar_lea.hbm %s2544_s5, %s1394_s14 }
  0x55   : > { %1444 = vmatpush3.bf16.msra.mxu0 %v1610_v0  ;;  %v1618_v4 = vld [vmem:[%s2098_s6] sm:$0xff]   ;;  %v1615_v6 = vld [vmem:[#allocation5 + $0x10] sm:$0xff]   ;;  %v1616_v7 = vld [vmem:[#allocation5 + $0x8] sm:$0xff]   ;;  %s1249_s7 = sshll.u32 %s2424_s13, 4  ;;  %s1236_s22 = scalar_lea.sflag [#allocation4], %s2094_s30  ;;  %s2494_s7 = int_to_ptr.vmem [resolvable:$true] %s1249_s7 }
  0x56   : > { %1445 = vmatprep.subr.bf16.mxu0 %v1611_v1  ;;  %1459 = vmatprep.mubr.bf16.mxu0 %v1618_v4  ;;  %v1617_v8 = vld [vmem:[#allocation5] sm:$0xff]   ;;  %v1634_v9 = vld [vmem:[#allocation7 + $0x38] sm:$0xff]   ;;  %v1635_v10 = vld [vmem:[#allocation7 + $0x30] sm:$0xff]   ;;  %s1850_s16 = scalar_lea.vmem %s2494_s7, 4096  ;;  %p2561_p2 = scmp.ne.s32.totalorder %s2554_s23, 0 }
  0x57   : > { %1491 = vmatprep.subr.bf16.mxu1 %v1634_v9  ;;  %v1619_v11 = vld [vmem:[%s2098_s6 + $0x8] sm:$0xff]   ;;  %v1620_v13 = vld [vmem:[%s2098_s6 + $0x10] sm:$0xff]   ;;  %v1637_v14 = vld [vmem:[#allocation7 + $0x20] sm:$0xff]   ;;  %p1851_p5 = scmp.ne.s32.totalorder %s2494_s7, %s1850_s16  ;;  %s1925_s8 = smov [#allocation8]  }
  0x58   : > { %1492 = vmatpush3.bf16.msra.mxu1 %v1634_v9  ;;  %v1636_v12 = vld [vmem:[#allocation7 + $0x28] sm:$0xff]   ;;  %v1638_v15 = vld [vmem:[#allocation7 + $0x18] sm:$0xff]   ;;  %v1622_v17 = vld [vmem:[%s2098_s6 + $0x20] sm:$0xff]   ;;  %s1854_s29 = sshll.u32 %s1925_s8, 4  ;;  %s1855_s29 = int_to_ptr.vmem [resolvable:$false] %s1854_s29 }
  0x59   : > { %1446 = vmatpush3.bf16.msra.mxu0 %v1611_v1  ;;  %1493 = vmatprep.subr.bf16.mxu1 %v1635_v10  ;;  %v1621_v16 = vld [vmem:[%s2098_s6 + $0x18] sm:$0xff]   ;;  %v1623_v18 = vld [vmem:[%s2098_s6 + $0x28] sm:$0xff]   ;;  %v1624_v19 = vld [vmem:[%s2098_s6 + $0x30] sm:$0xff]   ;;  %p1852_p7 = pnand %p1851_p5, %p2561_p2  ;;  %p1857_p13 = scmp.lt.s32.totalorder %s2494_s7, %s1855_s29 }
  0x5a   : > { %1447 = vmatprep.subr.bf16.mxu0 %v1612_v2  ;;  %v1625_v20 = vld [vmem:[%s2098_s6 + $0x38] sm:$0xff]   ;;  %v1626_v21 = vld [vmem:[%s2098_s6 + $0x40] sm:$0xff]   ;;  %v1627_v22 = vld [vmem:[%s2098_s6 + $0x48] sm:$0xff]  }
  0x5b   : > { %v1628_v23 = vld [vmem:[%s2098_s6 + $0x50] sm:$0xff]   ;;  %v1629_v24 = vld [vmem:[%s2098_s6 + $0x58] sm:$0xff]   ;;  %v1630_v25 = vld [vmem:[%s2098_s6 + $0x60] sm:$0xff]   ;;  %p1853_p12 = pneg %p1852_p7 }
  0x5c   : > { %1494 = vmatpush3.bf16.msra.mxu1 %v1635_v10  ;;  %v1631_v26 = vld [vmem:[%s2098_s6 + $0x68] sm:$0xff]   ;;  %v1632_v27 = vld [vmem:[%s2098_s6 + $0x70] sm:$0xff]   ;;  %v1633_v28 = vld [vmem:[%s2098_s6 + $0x78] sm:$0xff]   ;;  %s1856_s6 = scalar_lea.vmem %s1855_s29, 8192 }
  0x5d   : > { %1448 = vmatpush3.bf16.msra.mxu0 %v1612_v2  ;;  %1495 = vmatprep.subr.bf16.mxu1 %v1636_v12  ;;  %v1639_v29 = vld [vmem:[#allocation7 + $0x10] sm:$0xff]   ;;  %v1640_v30 = vld [vmem:[#allocation7 + $0x8] sm:$0xff]   ;;  %v1641_v31 = vld [vmem:[#allocation7] sm:$0xff]   ;;  %p1858_p0 = scmp.lt.s32.totalorder %s1856_s6, %s1850_s16 }
  0x5e   : > { %1449 = vmatprep.subr.bf16.mxu0 %v1613_v3  ;;  %v2127_v34 = vld [vmem:[%s2541_s2] ss:$0 sm:$0xff] }
  0x5f   : > { %p1859_p10 = por %p1858_p0, %p1857_p13 }
  0x60   : > { %1496 = vmatpush3.bf16.msra.mxu1 %v1636_v12 }
  0x61   : > { %1450 = vmatpush3.bf16.msra.mxu0 %v1613_v3  ;;  %1497 = vmatprep.subr.bf16.mxu1 %v1637_v14  ;;  %p1860_p3 = pnand %p1859_p10, %p1853_p12 }
  0x62   : > { %1451 = vmatprep.subr.bf16.mxu0 %v1614_v5 }
  0x64   : > { %1498 = vmatpush3.bf16.msra.mxu1 %v1637_v14 }
  0x65   : > { %1452 = vmatpush3.bf16.msra.mxu0 %v1614_v5  ;;  %1499 = vmatprep.subr.bf16.mxu1 %v1638_v15 }
  0x66   : > { %1453 = vmatprep.subr.bf16.mxu0 %v1615_v6 }
  0x68   : > { %1500 = vmatpush3.bf16.msra.mxu1 %v1638_v15 }
  0x69   : > { %1454 = vmatpush3.bf16.msra.mxu0 %v1615_v6  ;;  %1501 = vmatprep.subr.bf16.mxu1 %v1639_v29 }
  0x6a   : > { %1455 = vmatprep.subr.bf16.mxu0 %v1616_v7 }
  0x6c   : > { %1502 = vmatpush3.bf16.msra.mxu1 %v1639_v29 }
  0x6d   : > { %1456 = vmatpush3.bf16.msra.mxu0 %v1616_v7  ;;  %1503 = vmatprep.subr.bf16.mxu1 %v1640_v30 }
  0x6e   : > { %1457 = vmatprep.subr.bf16.mxu0 %v1617_v8 }
  0x70   : > { %1504 = vmatpush3.bf16.msra.mxu1 %v1640_v30 }
  0x71   : > { %1458 = vmatpush3.bf16.msra.mxu0 %v1617_v8  ;;  %1505 = vmatprep.subr.bf16.mxu1 %v1641_v31 }
  0x74   : > { %1460 = vmatmul.mubr.bf16.vlgmr.msra.gmra.mxu0 %v1619_v11  ;;  %1506 = vmatpush3.bf16.msra.mxu1 %v1641_v31 }
  0x75   : > { %1463 = vmatprep.mubr.bf16.mxu0 %v1620_v13 }
  0x7c   : > { %1464 = vmatmul.mubr.bf16.gmra.mxu0 %v1621_v16 }
  0x7d   : > { %1467 = vmatprep.mubr.bf16.mxu0 %v1622_v17 }
  0x84   : > { %1468 = vmatmul.mubr.bf16.gmra.mxu0 %v1623_v18 }
  0x85   : > { %1471 = vmatprep.mubr.bf16.mxu0 %v1624_v19 }
  0x8c   : > { %1472 = vmatmul.mubr.bf16.gmra.mxu0 %v1625_v20 }
  0x8d   : > { %1475 = vmatprep.mubr.bf16.mxu0 %v1626_v21 }
  0x94   : > { %1476 = vmatmul.mubr.bf16.gmra.mxu0 %v1627_v22 }
  0x95   : > { %1479 = vmatprep.mubr.bf16.mxu0 %v1628_v23 }
  0x9c   : > { %1480 = vmatmul.mubr.bf16.gmra.mxu0 %v1629_v24 }
  0x9d   : > { %1483 = vmatprep.mubr.bf16.mxu0 %v1630_v25 }
  0xa4   : > { %1484 = vmatmul.mubr.bf16.gmra.mxu0 %v1631_v26 }
  0xa5   : > { %1487 = vmatprep.mubr.bf16.mxu0 %v1632_v27 }
  0xac   : > { %1488 = vmatmul.mubr.bf16.gmra.mxu0 %v1633_v28 }
 0x134   : > { %v1461_v32 = vpop.f32.mrf.mxu0 }
 0x135   : > { %v517_v38 = vadd.f32 %v1461_v32, %v2127_v34 }
 0x136   : > { %v508_v33 = vpop.f32.mrf.mxu0 }
 0x137   : > { %v509_v36 = vadd.f32 %v2127_v34, %v508_v33  ;;  %v637_v45 = vmax.f32 %v517_v38, 0.0 }
 0x138   : > { %v1462_v35 = vpop.f32.mrf.mxu0 }
 0x139   : > { %v520_v37 = vadd.f32 %v1462_v35, %v2127_v34  ;;  %v635_v43 = vmax.f32 %v509_v36, 0.0 }
 0x13a   : > { %v511_v39 = vpop.f32.mrf.mxu0 }
 0x13b   : > { %v512_v40 = vadd.f32 %v2127_v34, %v511_v39  ;;  %v638_v41 = vmax.f32 %v520_v37, 0.0 }
 0x13c   : > { %v1465_v42 = vpop.f32.mrf.mxu0 }
 0x13d   : > { %v636_v44 = vmax.f32 %v512_v40, 0.0  ;;  %v668_v48 = vpack.c.bf16 %v638_v41, %v637_v45  ;;  %v533_v52 = vadd.f32 %v1465_v42, %v2127_v34 }
 0x13e   : > { %v524_v46 = vpop.f32.mrf.mxu0 }
 0x13f   : > { %v667_v47 = vpack.c.bf16 %v636_v44, %v635_v43  ;;  %v525_v50 = vadd.f32 %v2127_v34, %v524_v46  ;;  %v641_v59 = vmax.f32 %v533_v52, 0.0 }
 0x140   : > { %v1466_v49 = vpop.f32.mrf.mxu0 }
 0x141   : > { %v536_v51 = vadd.f32 %v1466_v49, %v2127_v34  ;;  %1507 = vmatprep.mubr.bf16.mxu1 %v667_v47  ;;  %v639_v57 = vmax.f32 %v525_v50, 0.0 }
 0x142   : > { %v527_v53 = vpop.f32.mrf.mxu0  ;;  %1508 = vmatmul.mubr.bf16.vlgmr.msra.gmra.mxu1 %v668_v48 }
 0x143   : > { %v528_v54 = vadd.f32 %v2127_v34, %v527_v53  ;;  %v642_v55 = vmax.f32 %v536_v51, 0.0 }
 0x144   : > { %v1469_v56 = vpop.f32.mrf.mxu0 }
 0x145   : > { %v640_v58 = vmax.f32 %v528_v54, 0.0  ;;  %v670_v62 = vpack.c.bf16 %v642_v55, %v641_v59  ;;  %v549_v2 = vadd.f32 %v1469_v56, %v2127_v34 }
 0x146   : > { %v540_v60 = vpop.f32.mrf.mxu0 }
 0x147   : > { %v669_v61 = vpack.c.bf16 %v640_v58, %v639_v57  ;;  %v541_v0 = vadd.f32 %v2127_v34, %v540_v60  ;;  %v645_v9 = vmax.f32 %v549_v2, 0.0 }
 0x148   : > { %v1470_v63 = vpop.f32.mrf.mxu0 }
 0x149   : > { %v552_v1 = vadd.f32 %v1470_v63, %v2127_v34  ;;  %1511 = vmatprep.mubr.bf16.mxu1 %v669_v61  ;;  %v643_v7 = vmax.f32 %v541_v0, 0.0 }
 0x14a   : > { %v543_v3 = vpop.f32.mrf.mxu0  ;;  %1512 = vmatmul.mubr.bf16.gmra.mxu1 %v670_v62 }
 0x14b   : > { %v544_v4 = vadd.f32 %v2127_v34, %v543_v3  ;;  %v646_v5 = vmax.f32 %v552_v1, 0.0 }
 0x14c   : > { %v1473_v6 = vpop.f32.mrf.mxu0 }
 0x14d   : > { %v644_v8 = vmax.f32 %v544_v4, 0.0  ;;  %v672_v12 = vpack.c.bf16 %v646_v5, %v645_v9  ;;  %v565_v16 = vadd.f32 %v1473_v6, %v2127_v34 }
 0x14e   : > { %v556_v10 = vpop.f32.mrf.mxu0 }
 0x14f   : > { %v671_v11 = vpack.c.bf16 %v644_v8, %v643_v7  ;;  %v557_v14 = vadd.f32 %v2127_v34, %v556_v10  ;;  %v649_v23 = vmax.f32 %v565_v16, 0.0 }
 0x150   : > { %v1474_v13 = vpop.f32.mrf.mxu0 }
 0x151   : > { %v568_v15 = vadd.f32 %v1474_v13, %v2127_v34  ;;  %1515 = vmatprep.mubr.bf16.mxu1 %v671_v11  ;;  %v647_v21 = vmax.f32 %v557_v14, 0.0 }
 0x152   : > { %v559_v17 = vpop.f32.mrf.mxu0  ;;  %1516 = vmatmul.mubr.bf16.gmra.mxu1 %v672_v12 }
 0x153   : > { %v560_v18 = vadd.f32 %v2127_v34, %v559_v17  ;;  %v650_v19 = vmax.f32 %v568_v15, 0.0 }
 0x154   : > { %v1477_v20 = vpop.f32.mrf.mxu0 }
 0x155   : > { %v648_v22 = vmax.f32 %v560_v18, 0.0  ;;  %v674_v26 = vpack.c.bf16 %v650_v19, %v649_v23  ;;  %v581_v30 = vadd.f32 %v1477_v20, %v2127_v34  ;;  %v2164_v18 = vld [vmem:[%s2543_s4] ss:$0 sm:$0xff] }
 0x156   : > { %v572_v24 = vpop.f32.mrf.mxu0 }
 0x157   : > { %v673_v25 = vpack.c.bf16 %v648_v22, %v647_v21  ;;  %v573_v28 = vadd.f32 %v2127_v34, %v572_v24  ;;  %v653_v38 = vmax.f32 %v581_v30, 0.0 }
 0x158   : > { %v1478_v27 = vpop.f32.mrf.mxu0 }
 0x159   : > { %v584_v29 = vadd.f32 %v1478_v27, %v2127_v34  ;;  %1519 = vmatprep.mubr.bf16.mxu1 %v673_v25  ;;  %v651_v36 = vmax.f32 %v573_v28, 0.0 }
 0x15a   : > { %v575_v31 = vpop.f32.mrf.mxu0  ;;  %1520 = vmatmul.mubr.bf16.gmra.mxu1 %v674_v26 }
 0x15b   : > { %v576_v32 = vadd.f32 %v2127_v34, %v575_v31  ;;  %v654_v33 = vmax.f32 %v584_v29, 0.0 }
 0x15c   : > { %v1481_v35 = vpop.f32.mrf.mxu0 }
 0x15d   : > { %v652_v37 = vmax.f32 %v576_v32, 0.0  ;;  %v676_v41 = vpack.c.bf16 %v654_v33, %v653_v38  ;;  %v597_v45 = vadd.f32 %v1481_v35, %v2127_v34 }
 0x15e   : > { %v588_v39 = vpop.f32.mrf.mxu0 }
 0x15f   : > { %v675_v40 = vpack.c.bf16 %v652_v37, %v651_v36  ;;  %v589_v43 = vadd.f32 %v2127_v34, %v588_v39  ;;  %v657_v52 = vmax.f32 %v597_v45, 0.0 }
 0x160   : > { %v1482_v42 = vpop.f32.mrf.mxu0 }
 0x161   : > { %v600_v44 = vadd.f32 %v1482_v42, %v2127_v34  ;;  %1523 = vmatprep.mubr.bf16.mxu1 %v675_v40  ;;  %v655_v50 = vmax.f32 %v589_v43, 0.0 }
 0x162   : > { %v591_v46 = vpop.f32.mrf.mxu0  ;;  %1524 = vmatmul.mubr.bf16.gmra.mxu1 %v676_v41 }
 0x163   : > { %v592_v47 = vadd.f32 %v2127_v34, %v591_v46  ;;  %v658_v48 = vmax.f32 %v600_v44, 0.0 }
 0x164   : > { %v1485_v49 = vpop.f32.mrf.mxu0 }
 0x165   : > { %v656_v51 = vmax.f32 %v592_v47, 0.0  ;;  %v678_v55 = vpack.c.bf16 %v658_v48, %v657_v52  ;;  %v613_v59 = vadd.f32 %v1485_v49, %v2127_v34 }
 0x166   : > { %v604_v53 = vpop.f32.mrf.mxu0 }
 0x167   : > { %v677_v54 = vpack.c.bf16 %v656_v51, %v655_v50  ;;  %v605_v57 = vadd.f32 %v2127_v34, %v604_v53  ;;  %v661_v2 = vmax.f32 %v613_v59, 0.0 }
 0x168   : > { %v1486_v56 = vpop.f32.mrf.mxu0 }
 0x169   : > { %v616_v58 = vadd.f32 %v1486_v56, %v2127_v34  ;;  %1527 = vmatprep.mubr.bf16.mxu1 %v677_v54  ;;  %v659_v0 = vmax.f32 %v605_v57, 0.0 }
 0x16a   : > { %v607_v60 = vpop.f32.mrf.mxu0  ;;  %1528 = vmatmul.mubr.bf16.gmra.mxu1 %v678_v55 }
 0x16b   : > { %v608_v61 = vadd.f32 %v2127_v34, %v607_v60  ;;  %v662_v62 = vmax.f32 %v616_v58, 0.0 }
 0x16c   : > { %v1489_v63 = vpop.f32.mrf.mxu0 }
 0x16d   : > { %v660_v1 = vmax.f32 %v608_v61, 0.0  ;;  %v680_v5 = vpack.c.bf16 %v662_v62, %v661_v2  ;;  %v629_v9 = vadd.f32 %v1489_v63, %v2127_v34 }
 0x16e   : > { %v620_v3 = vpop.f32.mrf.mxu0 }
 0x16f   : > { %v679_v4 = vpack.c.bf16 %v660_v1, %v659_v0  ;;  %v621_v7 = vadd.f32 %v2127_v34, %v620_v3  ;;  %v665_v15 = vmax.f32 %v629_v9, 0.0 }
 0x170   : > { %v1490_v6 = vpop.f32.mrf.mxu0 }
 0x171   : > { %v632_v8 = vadd.f32 %v1490_v6, %v2127_v34  ;;  %1531 = vmatprep.mubr.bf16.mxu1 %v679_v4  ;;  %v663_v13 = vmax.f32 %v621_v7, 0.0 }
 0x172   : > { %v623_v10 = vpop.f32.mrf.mxu0  ;;  %1532 = vmatmul.mubr.bf16.gmra.mxu1 %v680_v5 }
 0x173   : > { %v624_v11 = vadd.f32 %v2127_v34, %v623_v10  ;;  %v666_v12 = vmax.f32 %v632_v8, 0.0 }
 0x175   : > { %v664_v14 = vmax.f32 %v624_v11, 0.0  ;;  %v682_v17 = vpack.c.bf16 %v666_v12, %v665_v15 }
 0x177   : > { %v681_v16 = vpack.c.bf16 %v664_v14, %v663_v13 }
 0x179   : > { %1535 = vmatprep.mubr.bf16.mxu1 %v681_v16 }
 0x17a   : > { %1536 = vmatmul.mubr.bf16.gmra.mxu1 %v682_v17 }
 0x202   : > { %v1509_v19 = vpop.f32.mrf.mxu1 }
 0x203   : > { %v2167_v20 = vadd.f32 %v1509_v19, %v2164_v18 }
 0x204   : > { %v788_v21 = vpop.f32.mrf.mxu1 }
 0x205   : > { %v2170_v34 = vadd.f32 %v2164_v18, %v788_v21  ;;  %919 = vmax.xlane.f32.xlu1 %v2167_v20 }
 0x206   : > { %v1510_v22 = vpop.f32.mrf.mxu1 }
 0x207   : > { %v2174_v23 = vadd.f32 %v1510_v22, %v2164_v18  ;;  %915 = vmax.xlane.f32.xlu0 %v2170_v34 }
 0x208   : > { %v791_v24 = vpop.f32.mrf.mxu1 }
 0x209   : > { %v2178_v25 = vadd.f32 %v2164_v18, %v791_v24  ;;  %921 = vmax.xlane.f32.xlu1 %v2174_v23 }
 0x20a   : > { %v1513_v26 = vpop.f32.mrf.mxu1 }
 0x20b   : > { %917 = vmax.xlane.f32.xlu0 %v2178_v25  ;;  %v2183_v28 = vadd.f32 %v1513_v26, %v2164_v18 }
 0x20c   : > { %v804_v27 = vpop.f32.mrf.mxu1 }
 0x20d   : > { %v2190_v32 = vadd.f32 %v2164_v18, %v804_v27 }
 0x20e   : > { %v1514_v29 = vpop.f32.mrf.mxu1 }
 0x20f   : > { %v2186_v30 = vadd.f32 %v1514_v29, %v2164_v18  ;;  %927 = vmax.xlane.f32.xlu0 %v2183_v28 }
 0x210   : > { %v807_v31 = vpop.f32.mrf.mxu1 }
 0x211   : > { %929 = vmax.xlane.f32.xlu1 %v2186_v30  ;;  %v2194_v35 = vadd.f32 %v2164_v18, %v807_v31 }
 0x212   : > { %v1517_v33 = vpop.f32.mrf.mxu1 }
 0x213   : > { %923 = vmax.xlane.f32.xlu0 %v2190_v32  ;;  %v2198_v37 = vadd.f32 %v1517_v33, %v2164_v18 }
 0x214   : > { %v820_v36 = vpop.f32.mrf.mxu1 }
 0x215   : > { %925 = vmax.xlane.f32.xlu1 %v2194_v35  ;;  %v2206_v41 = vadd.f32 %v2164_v18, %v820_v36 }
 0x216   : > { %v1518_v38 = vpop.f32.mrf.mxu1 }
 0x217   : > { %v2202_v39 = vadd.f32 %v1518_v38, %v2164_v18  ;;  %935 = vmax.xlane.f32.xlu0 %v2198_v37 }
 0x218   : > { %v823_v40 = vpop.f32.mrf.mxu1 }
 0x219   : > { %937 = vmax.xlane.f32.xlu1 %v2202_v39  ;;  %v2210_v43 = vadd.f32 %v2164_v18, %v823_v40 }
 0x21a   : > { %v1521_v42 = vpop.f32.mrf.mxu1 }
 0x21b   : > { %931 = vmax.xlane.f32.xlu0 %v2206_v41  ;;  %v2214_v45 = vadd.f32 %v1521_v42, %v2164_v18 }
 0x21c   : > { %v836_v44 = vpop.f32.mrf.mxu1 }
 0x21d   : > { %933 = vmax.xlane.f32.xlu1 %v2210_v43  ;;  %v2222_v49 = vadd.f32 %v2164_v18, %v836_v44 }
 0x21e   : > { %v1522_v46 = vpop.f32.mrf.mxu1 }
 0x21f   : > { %v2218_v47 = vadd.f32 %v1522_v46, %v2164_v18  ;;  %943 = vmax.xlane.f32.xlu0 %v2214_v45 }
 0x220   : > { %v839_v48 = vpop.f32.mrf.mxu1 }
 0x221   : > { %945 = vmax.xlane.f32.xlu1 %v2218_v47  ;;  %v2226_v51 = vadd.f32 %v2164_v18, %v839_v48 }
 0x222   : > { %v1525_v50 = vpop.f32.mrf.mxu1 }
 0x223   : > { %939 = vmax.xlane.f32.xlu0 %v2222_v49  ;;  %v2230_v53 = vadd.f32 %v1525_v50, %v2164_v18 }
 0x224   : > { %v852_v52 = vpop.f32.mrf.mxu1 }
 0x225   : > { %941 = vmax.xlane.f32.xlu1 %v2226_v51  ;;  %v2238_v57 = vadd.f32 %v2164_v18, %v852_v52 }
 0x226   : > { %v1526_v54 = vpop.f32.mrf.mxu1 }
 0x227   : > { %v2234_v55 = vadd.f32 %v1526_v54, %v2164_v18  ;;  %951 = vmax.xlane.f32.xlu0 %v2230_v53 }
 0x228   : > { %v855_v56 = vpop.f32.mrf.mxu1 }
 0x229   : > { %953 = vmax.xlane.f32.xlu1 %v2234_v55  ;;  %v2242_v59 = vadd.f32 %v2164_v18, %v855_v56 }
 0x22a   : > { %v1529_v58 = vpop.f32.mrf.mxu1 }
 0x22b   : > { %947 = vmax.xlane.f32.xlu0 %v2238_v57  ;;  %v2246_v61 = vadd.f32 %v1529_v58, %v2164_v18 }
 0x22c   : > { %v868_v60 = vpop.f32.mrf.mxu1 }
 0x22d   : > { %949 = vmax.xlane.f32.xlu1 %v2242_v59  ;;  %v2254_v1 = vadd.f32 %v2164_v18, %v868_v60 }
 0x22e   : > { %v1530_v62 = vpop.f32.mrf.mxu1 }
 0x22f   : > { %v2250_v63 = vadd.f32 %v1530_v62, %v2164_v18  ;;  %959 = vmax.xlane.f32.xlu0 %v2246_v61 }
 0x230   : > { %v871_v0 = vpop.f32.mrf.mxu1 }
 0x231   : > { %961 = vmax.xlane.f32.xlu1 %v2250_v63  ;;  %v2258_v3 = vadd.f32 %v2164_v18, %v871_v0 }
 0x232   : > { %v1533_v2 = vpop.f32.mrf.mxu1 }
 0x233   : > { %955 = vmax.xlane.f32.xlu0 %v2254_v1  ;;  %v2262_v5 = vadd.f32 %v1533_v2, %v2164_v18 }
 0x234   : > { %v884_v4 = vpop.f32.mrf.mxu1 }
 0x235   : > { %957 = vmax.xlane.f32.xlu1 %v2258_v3  ;;  %v2270_v9 = vadd.f32 %v2164_v18, %v884_v4 }
 0x236   : > { %v1534_v6 = vpop.f32.mrf.mxu1 }
 0x237   : > { %v2266_v7 = vadd.f32 %v1534_v6, %v2164_v18  ;;  %967 = vmax.xlane.f32.xlu0 %v2262_v5 }
 0x238   : > { %v887_v8 = vpop.f32.mrf.mxu1 }
 0x239   : > { %969 = vmax.xlane.f32.xlu1 %v2266_v7  ;;  %v2274_v11 = vadd.f32 %v2164_v18, %v887_v8 }
 0x23a   : > { %v1537_v10 = vpop.f32.mrf.mxu1 }
 0x23b   : > { %963 = vmax.xlane.f32.xlu0 %v2270_v9  ;;  %v2283_v16 = vadd.f32 %v1537_v10, %v2164_v18 }
 0x23c   : > { %v900_v12 = vpop.f32.mrf.mxu1 }
 0x23d   : > { %v2278_v13 = vadd.f32 %v2164_v18, %v900_v12  ;;  %965 = vmax.xlane.f32.xlu1 %v2274_v11 }
 0x23e   : > { %v1538_v14 = vpop.f32.mrf.mxu1 }
 0x23f   : > { %971 = vmax.xlane.f32.xlu0 %v2278_v13  ;;  %v2291_v19 = vadd.f32 %v1538_v14, %v2164_v18 }
 0x240   : > { %v903_v15 = vpop.f32.mrf.mxu1 }
 0x241   : > { %v2286_v17 = vadd.f32 %v2164_v18, %v903_v15 }
 0x243   : > { %973 = vmax.xlane.f32.xlu1 %v2286_v17  ;;  %975 = vmax.xlane.f32.xlu0 %v2283_v16 }
 0x247   : > { %977 = vmax.xlane.f32.xlu1 %v2291_v19 }
 0x28e   : > { %v920_v21 = vpop.xlane.xlu1 %919 }
 0x28f   : > { %v981_v22 = vsub.f32 %v2167_v20, %v920_v21 }
 0x290   : > { %v916_v24 = vpop.xlane.xlu0 %915 }
 0x291   : > { %v1015_v26 = vmul.f32 1.442695, %v981_v22  ;;  %v979_v27 = vsub.f32 %v2170_v34, %v916_v24 }
 0x292   : > { %v922_v29 = vpop.xlane.xlu1 %921 }
 0x293   : > { %1642 = vpow2.f32 %v1015_v26  ;;  %v1011_v31 = vmul.f32 1.442695, %v979_v27  ;;  %v982_v33 = vsub.f32 %v2174_v23, %v922_v29 }
 0x294   : > { %v918_v36 = vpop.xlane.xlu0 %917 }
 0x295   : > { %v1017_v38 = vmul.f32 1.442695, %v982_v33  ;;  %v980_v40 = vsub.f32 %v2178_v25, %v918_v36  ;;  %1644 = vpow2.f32 %v1011_v31 }
 0x297   : > { %1646 = vpow2.f32 %v1017_v38  ;;  %v1013_v18 = vmul.f32 1.442695, %v980_v40 }
 0x298   : > { %v928_v42 = vpop.xlane.xlu0 %927 }
 0x299   : > { %v985_v44 = vsub.f32 %v2183_v28, %v928_v42  ;;  %1648 = vpow2.f32 %v1013_v18 }
 0x29a   : > { %v930_v20 = vpop.xlane.xlu1 %929 }
 0x29b   : > { %v1023_v46 = vmul.f32 1.442695, %v985_v44  ;;  %v986_v34 = vsub.f32 %v2186_v30, %v930_v20 }
 0x29c   : > { %v924_v48 = vpop.xlane.xlu0 %923 }
 0x29d   : > { %1650 = vpow2.f32 %v1023_v46  ;;  %v1025_v50 = vmul.f32 1.442695, %v986_v34  ;;  %v983_v23 = vsub.f32 %v2190_v32, %v924_v48 }
 0x29e   : > { %v926_v52 = vpop.xlane.xlu1 %925 }
 0x29f   : > { %1652 = vpow2.f32 %v1025_v50  ;;  %v1019_v54 = vmul.f32 1.442695, %v983_v23  ;;  %v984_v25 = vsub.f32 %v2194_v35, %v926_v52 }
 0x2a0   : > { %v2302_v56 = vpop.eup %1642  ;;  %v936_v58 = vpop.xlane.xlu0 %935 }
 0x2a1   : > { %1654 = vpow2.f32 %v1019_v54  ;;  %v1021_v28 = vmul.f32 1.442695, %v984_v25  ;;  %v989_v60 = vsub.f32 %v2198_v37, %v936_v58  ;;  %1079 = vadd.xlane.f32.xlu0 %v2302_v56 }
 0x2a2   : > { %v938_v30 = vpop.xlane.xlu1 %937  ;;  %v2306_v62 = vpop.eup %1644 }
 0x2a3   : > { %1656 = vpow2.f32 %v1021_v28  ;;  %v1031_v0 = vmul.f32 1.442695, %v989_v60  ;;  %v990_v32 = vsub.f32 %v2202_v39, %v938_v30 }
 0x2a4   : > { %v2309_v2 = vpop.eup %1646  ;;  %v932_v4 = vpop.xlane.xlu0 %931 }
 0x2a5   : > { %1658 = vpow2.f32 %v1031_v0  ;;  %v1033_v35 = vmul.f32 1.442695, %v990_v32  ;;  %v987_v6 = vsub.f32 %v2206_v41, %v932_v4  ;;  %1081 = vadd.xlane.f32.xlu1 %v2309_v2  ;;  %1075 = vadd.xlane.f32.xlu0 %v2306_v62 }
 0x2a6   : > { %v934_v37 = vpop.xlane.xlu1 %933  ;;  %v2315_v12 = vpop.eup %1648 }
 0x2a7   : > { %1660 = vpow2.f32 %v1033_v35  ;;  %v1027_v8 = vmul.f32 1.442695, %v987_v6  ;;  %v988_v10 = vsub.f32 %v2210_v43, %v934_v37 }
 0x2a8   : > { %v944_v14 = vpop.xlane.xlu0 %943 }
 0x2a9   : > { %1662 = vpow2.f32 %v1027_v8  ;;  %v1029_v39 = vmul.f32 1.442695, %v988_v10  ;;  %v993_v15 = vsub.f32 %v2214_v45, %v944_v14  ;;  %1077 = vadd.xlane.f32.xlu1 %v2315_v12 }
 0x2aa   : > { %v2319_v21 = vpop.eup %1650  ;;  %v946_v41 = vpop.xlane.xlu1 %945 }
 0x2ab   : > { %1664 = vpow2.f32 %v1029_v39  ;;  %v1039_v22 = vmul.f32 1.442695, %v993_v15  ;;  %v994_v24 = vsub.f32 %v2218_v47, %v946_v41  ;;  %1087 = vadd.xlane.f32.xlu0 %v2319_v21 }
 0x2ac   : > { %v2323_v26 = vpop.eup %1652  ;;  %v940_v43 = vpop.xlane.xlu0 %939 }
 0x2ad   : > { %1666 = vpow2.f32 %v1039_v22  ;;  %v1041_v27 = vmul.f32 1.442695, %v994_v24  ;;  %v991_v29 = vsub.f32 %v2222_v49, %v940_v43  ;;  %1089 = vadd.xlane.f32.xlu1 %v2323_v26 }
 0x2ae   : > { %v2327_v45 = vpop.eup %1654  ;;  %v942_v31 = vpop.xlane.xlu1 %941 }
 0x2af   : > { %1668 = vpow2.f32 %v1041_v27  ;;  %v1035_v33 = vmul.f32 1.442695, %v991_v29  ;;  %v992_v36 = vsub.f32 %v2226_v51, %v942_v31  ;;  %1083 = vadd.xlane.f32.xlu0 %v2327_v45 }
 0x2b0   : > { %v2331_v47 = vpop.eup %1656  ;;  %v952_v38 = vpop.xlane.xlu0 %951 }
 0x2b1   : > { %1670 = vpow2.f32 %v1035_v33  ;;  %v1037_v40 = vmul.f32 1.442695, %v992_v36  ;;  %v997_v18 = vsub.f32 %v2230_v53, %v952_v38  ;;  %1085 = vadd.xlane.f32.xlu1 %v2331_v47 }
 0x2b2   : > { %v2335_v49 = vpop.eup %1658  ;;  %v954_v42 = vpop.xlane.xlu1 %953 }
 0x2b3   : > { %1672 = vpow2.f32 %v1037_v40  ;;  %v1047_v44 = vmul.f32 1.442695, %v997_v18  ;;  %v998_v20 = vsub.f32 %v2234_v55, %v954_v42  ;;  %1095 = vadd.xlane.f32.xlu0 %v2335_v49 }
 0x2b4   : > { %v2339_v51 = vpop.eup %1660  ;;  %v948_v46 = vpop.xlane.xlu0 %947 }
 0x2b5   : > { %1674 = vpow2.f32 %v1047_v44  ;;  %v1049_v34 = vmul.f32 1.442695, %v998_v20  ;;  %v995_v48 = vsub.f32 %v2238_v57, %v948_v46  ;;  %1097 = vadd.xlane.f32.xlu1 %v2339_v51 }
 0x2b6   : > { %v2343_v53 = vpop.eup %1662  ;;  %v950_v50 = vpop.xlane.xlu1 %949 }
 0x2b7   : > { %1676 = vpow2.f32 %v1049_v34  ;;  %v1043_v23 = vmul.f32 1.442695, %v995_v48  ;;  %v996_v52 = vsub.f32 %v2242_v59, %v950_v50  ;;  %1091 = vadd.xlane.f32.xlu0 %v2343_v53 }
 0x2b8   : > { %v2347_v55 = vpop.eup %1664  ;;  %v960_v54 = vpop.xlane.xlu0 %959 }
 0x2b9   : > { %1678 = vpow2.f32 %v1043_v23  ;;  %v1045_v25 = vmul.f32 1.442695, %v996_v52  ;;  %v1001_v58 = vsub.f32 %v2246_v61, %v960_v54  ;;  %1093 = vadd.xlane.f32.xlu1 %v2347_v55 }
 0x2ba   : > { %v2351_v57 = vpop.eup %1666  ;;  %v962_v28 = vpop.xlane.xlu1 %961 }
 0x2bb   : > { %1680 = vpow2.f32 %v1045_v25  ;;  %v1055_v60 = vmul.f32 1.442695, %v1001_v58  ;;  %v1002_v30 = vsub.f32 %v2250_v63, %v962_v28  ;;  %1103 = vadd.xlane.f32.xlu0 %v2351_v57 }
 0x2bc   : > { %v2355_v59 = vpop.eup %1668  ;;  %v956_v0 = vpop.xlane.xlu0 %955 }
 0x2bd   : > { %1682 = vpow2.f32 %v1055_v60  ;;  %v1057_v32 = vmul.f32 1.442695, %v1002_v30  ;;  %v999_v4 = vsub.f32 %v2254_v1, %v956_v0  ;;  %1105 = vadd.xlane.f32.xlu1 %v2355_v59 }
 0x2be   : > { %v2359_v61 = vpop.eup %1670  ;;  %v958_v35 = vpop.xlane.xlu1 %957 }
 0x2bf   : > { %1684 = vpow2.f32 %v1057_v32  ;;  %v1051_v6 = vmul.f32 1.442695, %v999_v4  ;;  %v1000_v37 = vsub.f32 %v2258_v3, %v958_v35  ;;  %1099 = vadd.xlane.f32.xlu0 %v2359_v61 }
 0x2c0   : > { %v2363_v63 = vpop.eup %1672  ;;  %v968_v8 = vpop.xlane.xlu0 %967 }
 0x2c1   : > { %1686 = vpow2.f32 %v1051_v6  ;;  %v1053_v10 = vmul.f32 1.442695, %v1000_v37  ;;  %v1005_v14 = vsub.f32 %v2262_v5, %v968_v8  ;;  %1101 = vadd.xlane.f32.xlu1 %v2363_v63 }
 0x2c2   : > { %v2367_v1 = vpop.eup %1674  ;;  %v970_v39 = vpop.xlane.xlu1 %969 }
 0x2c3   : > { %1688 = vpow2.f32 %v1053_v10  ;;  %v1063_v15 = vmul.f32 1.442695, %v1005_v14  ;;  %v1006_v41 = vsub.f32 %v2266_v7, %v970_v39  ;;  %1111 = vadd.xlane.f32.xlu0 %v2367_v1 }
 0x2c4   : > { %v2371_v3 = vpop.eup %1676  ;;  %v964_v22 = vpop.xlane.xlu0 %963 }
 0x2c5   : > { %1690 = vpow2.f32 %v1063_v15  ;;  %v1065_v24 = vmul.f32 1.442695, %v1006_v41  ;;  %v1003_v43 = vsub.f32 %v2270_v9, %v964_v22  ;;  %1113 = vadd.xlane.f32.xlu1 %v2371_v3 }
 0x2c6   : > { %v2375_v5 = vpop.eup %1678  ;;  %v966_v27 = vpop.xlane.xlu1 %965 }
 0x2c7   : > { %1692 = vpow2.f32 %v1065_v24  ;;  %v1059_v29 = vmul.f32 1.442695, %v1003_v43  ;;  %v1004_v31 = vsub.f32 %v2274_v11, %v966_v27  ;;  %1107 = vadd.xlane.f32.xlu0 %v2375_v5 }
 0x2c8   : > { %v2379_v7 = vpop.eup %1680  ;;  %v972_v33 = vpop.xlane.xlu0 %971 }
 0x2c9   : > { %1694 = vpow2.f32 %v1059_v29  ;;  %v1061_v36 = vmul.f32 1.442695, %v1004_v31  ;;  %v1007_v38 = vsub.f32 %v2278_v13, %v972_v33  ;;  %1109 = vadd.xlane.f32.xlu1 %v2379_v7 }
 0x2ca   : > { %v2383_v9 = vpop.eup %1682 }
 0x2cb   : > { %1696 = vpow2.f32 %v1061_v36  ;;  %v1067_v40 = vmul.f32 1.442695, %v1007_v38  ;;  %1119 = vadd.xlane.f32.xlu0 %v2383_v9 }
 0x2cc   : > { %v2386_v18 = vpop.eup %1684  ;;  %v974_v11 = vpop.xlane.xlu1 %973 }
 0x2cd   : > { %v976_v42 = vpop.xlane.xlu0 %975  ;;  %1698 = vpow2.f32 %v1067_v40  ;;  %v1008_v44 = vsub.f32 %v2286_v17, %v974_v11  ;;  %1121 = vadd.xlane.f32.xlu1 %v2386_v18 }
 0x2ce   : > { %v1009_v20 = vsub.f32 %v2283_v16, %v976_v42  ;;  %v2391_v13 = vpop.eup %1686 }
 0x2cf   : > { %v1069_v46 = vmul.f32 1.442695, %v1008_v44  ;;  %1115 = vadd.xlane.f32.xlu0 %v2391_v13 }
 0x2d0   : > { %v1071_v34 = vmul.f32 1.442695, %v1009_v20  ;;  %v2394_v48 = vpop.eup %1688  ;;  %v978_v50 = vpop.xlane.xlu1 %977 }
 0x2d1   : > { %1700 = vpow2.f32 %v1069_v46  ;;  %v1010_v23 = vsub.f32 %v2291_v19, %v978_v50  ;;  %1117 = vadd.xlane.f32.xlu1 %v2394_v48 }
 0x2d2   : > { %v2398_v52 = vpop.eup %1690  ;;  %1702 = vpow2.f32 %v1071_v34 }
 0x2d3   : > { %v1073_v16 = vmul.f32 1.442695, %v1010_v23  ;;  %1127 = vadd.xlane.f32.xlu0 %v2398_v52 }
 0x2d4   : > { %v2401_v17 = vpop.eup %1692 }
 0x2d5   : > { %1704 = vpow2.f32 %v1073_v16  ;;  %1129 = vadd.xlane.f32.xlu1 %v2401_v17 }
 0x2d6   : > { %v2404_v54 = vpop.eup %1694 }
 0x2d7   : > { %1123 = vadd.xlane.f32.xlu0 %v2404_v54 }
 0x2d8   : > { %v2407_v25 = vpop.eup %1696 }
 0x2d9   : > { %1125 = vadd.xlane.f32.xlu1 %v2407_v25 }
 0x2da   : > { %v2410_v19 = vpop.eup %1698 }
 0x2db   : > { %1131 = vadd.xlane.f32.xlu0 %v2410_v19 }
 0x2de   : > { %v2413_v58 = vpop.eup %1700 }
 0x2df   : > { %v2415_v28 = vpop.eup %1702  ;;  %1133 = vadd.xlane.f32.xlu1 %v2413_v58 }
 0x2e0   : > { %1135 = vadd.xlane.f32.xlu0 %v2415_v28 }
 0x2e2   : > { %v2419_v60 = vpop.eup %1704 }
 0x2e3   : > { %1137 = vadd.xlane.f32.xlu1 %v2419_v60 }
 0x32a   : > { %v1080_v30 = vpop.xlane.xlu0 %1079 }
 0x32b   : > { %1706 = vrcp.f32 %v1080_v30 }
 0x32e   : > { %v1082_v0 = vpop.xlane.xlu1 %1081  ;;  %v1076_v32 = vpop.xlane.xlu0 %1075 }
 0x32f   : > { %1708 = vrcp.f32 %v1082_v0 }
 0x330   : > { %1710 = vrcp.f32 %v1076_v32 }
 0x332   : > { %v1078_v4 = vpop.xlane.xlu1 %1077 }
 0x333   : > { %1712 = vrcp.f32 %v1078_v4 }
 0x334   : > { %v1088_v35 = vpop.xlane.xlu0 %1087 }
 0x335   : > { %1714 = vrcp.f32 %v1088_v35 }
 0x336   : > { %v1090_v6 = vpop.xlane.xlu1 %1089 }
 0x337   : > { %1716 = vrcp.f32 %v1090_v6 }
 0x338   : > { %v1707_v37 = vpop.eup %1706  ;;  %v1084_v8 = vpop.xlane.xlu0 %1083 }
 0x339   : > { %v1173_v10 = vmul.f32 %v1707_v37, %v2302_v56  ;;  %1718 = vrcp.f32 %v1084_v8 }
 0x33a   : > { %v1086_v14 = vpop.xlane.xlu1 %1085 }
 0x33b   : > { %1205 = vst [vmem:[%s2424_s13 + $0x10] sm:$0xff] %v1173_v10  ;;  %1720 = vrcp.f32 %v1086_v14 }
 0x33c   : > { %v1709_v39 = vpop.eup %1708  ;;  %v1096_v15 = vpop.xlane.xlu0 %1095 }
 0x33d   : > { %v1711_v41 = vpop.eup %1710  ;;  %v1174_v22 = vmul.f32 %v1709_v39, %v2309_v2  ;;  %1722 = vrcp.f32 %v1096_v15 }
 0x33e   : > { %v1171_v24 = vmul.f32 %v1711_v41, %v2306_v62  ;;  %v1098_v56 = vpop.xlane.xlu1 %1097 }
 0x33f   : > { %1206 = vst [vmem:[%s2424_s13 + $0x18] sm:$0xff] %v1174_v22  ;;  %1724 = vrcp.f32 %v1098_v56 }
 0x340   : > { %v1713_v43 = vpop.eup %1712  ;;  %1203 = vst [vmem:[%s2424_s13] sm:$0xff] %v1171_v24  ;;  %v1092_v27 = vpop.xlane.xlu0 %1091 }
 0x341   : > { %v1172_v29 = vmul.f32 %v1713_v43, %v2315_v12  ;;  %1726 = vrcp.f32 %v1092_v27 }
 0x342   : > { %v1715_v31 = vpop.eup %1714  ;;  %v1094_v33 = vpop.xlane.xlu1 %1093 }
 0x343   : > { %1204 = vst [vmem:[%s2424_s13 + $0x8] sm:$0xff] %v1172_v29  ;;  %v1177_v2 = vmul.f32 %v1715_v31, %v2319_v21  ;;  %1728 = vrcp.f32 %v1094_v33 }
 0x344   : > { %v1717_v36 = vpop.eup %1716  ;;  %v1104_v62 = vpop.xlane.xlu0 %1103 }
 0x345   : > { %1209 = vst [vmem:[%s2424_s13 + $0x30] sm:$0xff] %v1177_v2  ;;  %v1178_v38 = vmul.f32 %v1717_v36, %v2323_v26  ;;  %1730 = vrcp.f32 %v1104_v62 }
 0x346   : > { %v1719_v40 = vpop.eup %1718  ;;  %v1106_v11 = vpop.xlane.xlu1 %1105 }
 0x347   : > { %1210 = vst [vmem:[%s2424_s13 + $0x38] sm:$0xff] %v1178_v38  ;;  %v1175_v12 = vmul.f32 %v1719_v40, %v2327_v45  ;;  %1732 = vrcp.f32 %v1106_v11 }
 0x348   : > { %v1721_v42 = vpop.eup %1720  ;;  %v1100_v44 = vpop.xlane.xlu0 %1099 }
 0x349   : > { %1207 = vst [vmem:[%s2424_s13 + $0x20] sm:$0xff] %v1175_v12  ;;  %v1176_v21 = vmul.f32 %v1721_v42, %v2331_v47  ;;  %1734 = vrcp.f32 %v1100_v44 }
 0x34a   : > { %v1723_v20 = vpop.eup %1722  ;;  %v1102_v46 = vpop.xlane.xlu1 %1101 }
 0x34b   : > { %1208 = vst [vmem:[%s2424_s13 + $0x28] sm:$0xff] %v1176_v21  ;;  %v1181_v26 = vmul.f32 %v1723_v20, %v2335_v49  ;;  %1736 = vrcp.f32 %v1102_v46 }
 0x34c   : > { %v1725_v34 = vpop.eup %1724  ;;  %v1112_v50 = vpop.xlane.xlu0 %1111 }
 0x34d   : > { %1213 = vst [vmem:[%s2424_s13 + $0x50] sm:$0xff] %v1181_v26  ;;  %v1182_v45 = vmul.f32 %v1725_v34, %v2339_v51  ;;  %1738 = vrcp.f32 %v1112_v50 }
 0x34e   : > { %v1727_v23 = vpop.eup %1726  ;;  %v1114_v16 = vpop.xlane.xlu1 %1113 }
 0x34f   : > { %1214 = vst [vmem:[%s2424_s13 + $0x58] sm:$0xff] %v1182_v45  ;;  %v1179_v47 = vmul.f32 %v1727_v23, %v2343_v53  ;;  %1740 = vrcp.f32 %v1114_v16 }
 0x350   : > { %v1729_v30 = vpop.eup %1728  ;;  %v1108_v0 = vpop.xlane.xlu0 %1107 }
 0x351   : > { %1211 = vst [vmem:[%s2424_s13 + $0x40] sm:$0xff] %v1179_v47  ;;  %v1180_v49 = vmul.f32 %v1729_v30, %v2347_v55  ;;  %1742 = vrcp.f32 %v1108_v0 }
 0x352   : > { %v1731_v32 = vpop.eup %1730  ;;  %v1110_v4 = vpop.xlane.xlu1 %1109 }
 0x353   : > { %1212 = vst [vmem:[%s2424_s13 + $0x48] sm:$0xff] %v1180_v49  ;;  %v1185_v51 = vmul.f32 %v1731_v32, %v2351_v57  ;;  %1744 = vrcp.f32 %v1110_v4 }
 0x354   : > { %v1733_v35 = vpop.eup %1732  ;;  %v1120_v6 = vpop.xlane.xlu0 %1119 }
 0x355   : > { %1217 = vst [vmem:[%s2424_s13 + $0x70] sm:$0xff] %v1185_v51  ;;  %v1186_v53 = vmul.f32 %v1733_v35, %v2355_v59  ;;  %1746 = vrcp.f32 %v1120_v6 }
 0x356   : > { %v1735_v37 = vpop.eup %1734  ;;  %v1122_v8 = vpop.xlane.xlu1 %1121 }
 0x357   : > { %1218 = vst [vmem:[%s2424_s13 + $0x78] sm:$0xff] %v1186_v53  ;;  %v1183_v55 = vmul.f32 %v1735_v37, %v2359_v61  ;;  %1748 = vrcp.f32 %v1122_v8 }
 0x358   : > { %v1737_v10 = vpop.eup %1736  ;;  %v1116_v14 = vpop.xlane.xlu0 %1115 }
 0x359   : > { %1215 = vst [vmem:[%s2424_s13 + $0x60] sm:$0xff] %v1183_v55  ;;  %v1184_v57 = vmul.f32 %v1737_v10, %v2363_v63  ;;  %1750 = vrcp.f32 %v1116_v14 }
 0x35a   : > { %v1739_v39 = vpop.eup %1738  ;;  %v1118_v15 = vpop.xlane.xlu1 %1117 }
 0x35b   : > { %1216 = vst [vmem:[%s2424_s13 + $0x68] sm:$0xff] %v1184_v57  ;;  %v1189_v59 = vmul.f32 %v1739_v39, %v2367_v1  ;;  %1752 = vrcp.f32 %v1118_v15 }
 0x35c   : > { %v1741_v41 = vpop.eup %1740  ;;  %v1128_v22 = vpop.xlane.xlu0 %1127 }
 0x35d   : > { %1221 = vst [vmem:[%s2424_s13 + $0x90] sm:$0xff] %v1189_v59  ;;  %v1190_v61 = vmul.f32 %v1741_v41, %v2371_v3  ;;  %1754 = vrcp.f32 %v1128_v22 }
 0x35e   : > { %v1743_v24 = vpop.eup %1742  ;;  %v1130_v56 = vpop.xlane.xlu1 %1129 }
 0x35f   : > { %1222 = vst [vmem:[%s2424_s13 + $0x98] sm:$0xff] %v1190_v61  ;;  %v1187_v63 = vmul.f32 %v1743_v24, %v2375_v5  ;;  %1756 = vrcp.f32 %v1130_v56 }
 0x360   : > { %v1745_v43 = vpop.eup %1744  ;;  %v1124_v27 = vpop.xlane.xlu0 %1123 }
 0x361   : > { %1219 = vst [vmem:[%s2424_s13 + $0x80] sm:$0xff] %v1187_v63  ;;  %v1188_v1 = vmul.f32 %v1745_v43, %v2379_v7  ;;  %1758 = vrcp.f32 %v1124_v27 }
 0x362   : > { %v1747_v29 = vpop.eup %1746  ;;  %v1126_v31 = vpop.xlane.xlu1 %1125 }
 0x363   : > { %1220 = vst [vmem:[%s2424_s13 + $0x88] sm:$0xff] %v1188_v1  ;;  %v1193_v3 = vmul.f32 %v1747_v29, %v2383_v9  ;;  %1760 = vrcp.f32 %v1126_v31 }
 0x364   : > { %v1749_v33 = vpop.eup %1748  ;;  %v1132_v2 = vpop.xlane.xlu0 %1131 }
 0x365   : > { %1225 = vst [vmem:[%s2424_s13 + $0xb0] sm:$0xff] %v1193_v3  ;;  %v1194_v5 = vmul.f32 %v1749_v33, %v2386_v18  ;;  %1762 = vrcp.f32 %v1132_v2 }
 0x366   : > { %v1751_v36 = vpop.eup %1750 }
 0x367   : > { %1226 = vst [vmem:[%s2424_s13 + $0xb8] sm:$0xff] %v1194_v5  ;;  %v1191_v7 = vmul.f32 %v1751_v36, %v2391_v13 }
 0x368   : > { %v1753_v62 = vpop.eup %1752  ;;  %v1134_v38 = vpop.xlane.xlu1 %1133 }
 0x369   : > { %1223 = vst [vmem:[%s2424_s13 + $0xa0] sm:$0xff] %v1191_v7  ;;  %v1192_v40 = vmul.f32 %v1753_v62, %v2394_v48  ;;  %1764 = vrcp.f32 %v1134_v38  ;;  %v1136_v9 = vpop.xlane.xlu0 %1135 }
 0x36a   : > { %v1755_v11 = vpop.eup %1754  ;;  %1766 = vrcp.f32 %v1136_v9 }
 0x36b   : > { %1224 = vst [vmem:[%s2424_s13 + $0xa8] sm:$0xff] %v1192_v40  ;;  %v1197_v18 = vmul.f32 %v1755_v11, %v2398_v52 }
 0x36c   : > { %v1757_v12 = vpop.eup %1756  ;;  %v1138_v42 = vpop.xlane.xlu1 %1137 }
 0x36d   : > { %1229 = vst [vmem:[%s2424_s13 + $0xd0] sm:$0xff] %v1197_v18  ;;  %v1198_v13 = vmul.f32 %v1757_v12, %v2401_v17  ;;  %1768 = vrcp.f32 %v1138_v42 }
 0x36e   : > { %v1759_v44 = vpop.eup %1758 }
 0x36f   : > { %1230 = vst [vmem:[%s2424_s13 + $0xd8] sm:$0xff] %v1198_v13  ;;  %v1195_v48 = vmul.f32 %v1759_v44, %v2404_v54 }
 0x370   : > { %v1761_v21 = vpop.eup %1760 }
 0x371   : > { %1227 = vst [vmem:[%s2424_s13 + $0xc0] sm:$0xff] %v1195_v48  ;;  %v1196_v20 = vmul.f32 %v1761_v21, %v2407_v25 }
 0x372   : > { %v1763_v46 = vpop.eup %1762 }
 0x373   : > { %1228 = vst [vmem:[%s2424_s13 + $0xc8] sm:$0xff] %v1196_v20  ;;  %v1199_v52 = vmul.f32 %v1763_v46, %v2410_v19 }
 0x375   : > { %1231 = vst [vmem:[%s2424_s13 + $0xe0] sm:$0xff] %v1199_v52 }
 0x376   : > { %v1765_v17 = vpop.eup %1764 }
 0x377   : > { %v1767_v26 = vpop.eup %1766  ;;  %v1200_v34 = vmul.f32 %v1765_v17, %v2413_v58 }
 0x378   : > { %v1201_v54 = vmul.f32 %v1767_v26, %v2415_v28 }
 0x379   : > { %1232 = vst [vmem:[%s2424_s13 + $0xe8] sm:$0xff] %v1200_v34 }
 0x37a   : > { %v1769_v50 = vpop.eup %1768  ;;  %1233 = vst [vmem:[%s2424_s13 + $0xf0] sm:$0xff] %v1201_v54 }
 0x37b   : > { %v1202_v25 = vmul.f32 %v1769_v50, %v2419_v60 }
 0x37d   : > { %1234 = vst [vmem:[%s2424_s13 + $0xf8] sm:$0xff] %v1202_v25 }
 0x37e   : > { %1863 = shalt.err (!%p1860_p3)
}
 0x37f   : > { %s1864_s24 = scalar_lea.hbm %s2492_s17, 4096  ;;  %s1868_s10 = scalar_lea.hbm %s2544_s5, 8192 }
 0x380   : > { %p1865_p11 = scmp.ne.s32.totalorder %s2492_s17, %s1864_s24  ;;  %p1869_p4 = scmp.lt.s32.totalorder %s2492_s17, %s2544_s5 }
 0x381   : > { %p1870_p6 = scmp.lt.s32.totalorder %s1868_s10, %s1864_s24 }
 0x382   : > { %p1866_p9 = pnand %p1865_p11, %p2561_p2 }
 0x383   : > { %p1871_p8 = por %p1870_p6, %p1869_p4 }
 0x384   : > { %p1867_p1 = pneg %p1866_p9 }
 0x386   : > { %p1872_p5 = pnand %p1871_p8, %p1867_p1 }
 0x388   : > { %1875 = shalt.err (!%p1872_p5)
}
 0x389   : > { %s1926_s14 = smov 128   ;;  %s1927_s28 = smov 8  }
 0x38a   : > { %1549 = dma.vmem_to_hbm [thread:$0]  (%p2561_p2), %s2494_s7, 4096, %s2492_s17, %s1236_s22, %s1926_s14, %s1926_s14, %s1927_s28  }
 0x38b PF: > { %s1264_s11 = sand.u32 1, %s1906_s18   ;;  %p2562_p7 = scmp.ne.s32.totalorder %s2551_s25, 0 }
 0x38c   : > { %p2563_p12 = scmp.ge.s32.totalorder %s1918_s21, 2  ;;  %s1265_s16 = scalar_lea.sflag [#allocation4], %s1264_s11 }
 0x38e   : > { %p1563_p13 = pnand %p2563_p12, %p2562_p7 }
 0x390   : > { %p1564_p0 = pneg %p1563_p13 }
 0x392   : > { %1901 = dma.done.wait (%p1564_p0), %s1265_s16, 4096  }
 0x393   : > { %1903 = vsyncadd (%p1564_p0), %s1265_s16, 4294963200  ;;  %p19_p10 = scmp.ge.s32.totalorder %s2036_s15, 4   ;;  %s2564_s18 = smov %s1910_s19 }
 0x394   : > { %s2565_s19 = smov %s1914_s20  ;;  %s2566_s20 = smov %s2052_s27 }
 0x395   : > { %s2567_s21 = smov %s2036_s15  ;;  %21 = sbr.rel (!%p19_p10) target bundleno = 6 (0x6), region = 93 }
 0x39a   :  { %1270 = vsyncpa [#allocation3], 1 }
 0x39b   :  { %1272 = vsyncpa [#allocation3 + $0x1], 1 }
 0x39c   :  { %1273 = vsyncpa [#allocation6], 1 }
 0x39d   :  { %1274 = vsyncpa [#allocation4], 1 }
 0x39e   :  { %1276 = vsyncpa [#allocation4 + $0x1], 1 }

</bundles_post_ra>
